<compile_context>
chip_gen: v7x
topology: tpu7x:2x2x1
jax: 0.10.0
libtpu: 0.0.40
codegen_flags: <defaults>
</compile_context>

<pallas_src>
import jax
import jax.numpy as jnp
from jax.experimental import pallas as pl
from jax.experimental.pallas import tpu as pltpu

# Problem sizes (consistent with nn.Conv2d(3, 64, 5) on a 16x16 input).
N, CI, H, W = 2, 3, 16, 16
CO, KH, KW = 64, 5, 5
HO, WO = H - KH + 1, W - KW + 1          # 12, 12 (valid conv, stride 1)

K = KH * KW * CI                          # 75   (im2col contraction depth)
M = N * HO * WO                           # 288  (rows; multiple of 8)
K_PAD = 128                               # pad contraction to a full lane width
CO_PAD = 128                              # pad output channels -> lane-dense stores


def conv_matmul_kernel(p_ref, w_ref, b_ref, o_ref):
    # p_ref: (M, K_PAD)  w_ref: (K_PAD, CO_PAD)  b_ref: (1, CO_PAD)
    # o_ref: (M, CO_PAD)
    acc = jnp.dot(p_ref[...], w_ref[...], preferred_element_type=jnp.float32)
    o_ref[...] = (acc + b_ref[...]).astype(o_ref.dtype)


def conv2d_pallas(patches, w_flat, bias_row):
    return pl.pallas_call(
        conv_matmul_kernel,
        out_shape=jax.ShapeDtypeStruct((M, CO_PAD), jnp.float32),
        grid_spec=pltpu.PrefetchScalarGridSpec(
            num_scalar_prefetch=0,
            grid=(1,),  # single step: whole problem is one VMEM-resident block
            in_specs=[
                pl.BlockSpec((M, K_PAD), lambda i: (0, 0)),
                pl.BlockSpec((K_PAD, CO_PAD), lambda i: (0, 0)),
                pl.BlockSpec((1, CO_PAD), lambda i: (0, 0)),
            ],
            out_specs=pl.BlockSpec((M, CO_PAD), lambda i: (0, 0)),
        ),
    )(patches, w_flat, bias_row)


@jax.jit
def test_forward(x_nchw, w_oihw, bias):
    """Matches the intended PyTorch forward: x = self.conv1(x) (NCHW in/out)."""
    # --- im2col (done once here; XLA fuses these boundary ops) ---
    x_nhwc = jnp.transpose(x_nchw, (0, 2, 3, 1))                  # (N, H, W, CI)
    taps = [x_nhwc[:, kh:kh + HO, kw:kw + WO, :]                  # (N, HO, WO, CI)
            for kh in range(KH) for kw in range(KW)]
    patches = jnp.concatenate(taps, axis=-1).reshape(M, K)        # k = (kh, kw, ci)
    patches = jnp.pad(patches, ((0, 0), (0, K_PAD - K)))          # (M, 128)

    # --- flatten weights to (K, CO) with the matching (kh, kw, ci) ordering ---
    w_flat = jnp.transpose(w_oihw, (2, 3, 1, 0)).reshape(K, CO)   # HWIO -> (75, 64)
    w_flat = jnp.pad(w_flat, ((0, K_PAD - K), (0, CO_PAD - CO)))  # (128, 128)
    bias_row = jnp.pad(bias, (0, CO_PAD - CO)).reshape(1, CO_PAD)

    # --- single lane-dense matmul kernel ---
    y = conv2d_pallas(patches, w_flat, bias_row)                  # (288, 128)

    # --- back to NCHW, dropping the padded channels ---
    y = y[:, :CO].reshape(N, HO, WO, CO)
    return jnp.transpose(y, (0, 3, 1, 2))                         # (N, CO, HO, WO)


if __name__ == "__main__":
    key = jax.random.PRNGKey(0)
    kx, kw, kb = jax.random.split(key, 3)

    # Deterministic parameter init (PyTorch Conv2d default: U(-b, b), b=1/sqrt(fan_in)).
    fan_in = CI * KH * KW
    bound = 1.0 / (fan_in ** 0.5)
    w_oihw = jax.random.uniform(kw, (CO, CI, KH, KW), jnp.float32, -bound, bound)
    bias = jax.random.uniform(kb, (CO,), jnp.float32, -bound, bound)

    x = jax.random.normal(kx, (N, CI, H, W), jnp.float32)

    y = test_forward(x, w_oihw, bias)
    y = jax.block_until_ready(y)
    assert y.shape == (N, CO, HO, WO), y.shape

    # Sanity check against XLA's conv.
    y_ref = jax.lax.conv_general_dilated(
        x, w_oihw, window_strides=(1, 1), padding="VALID",
        dimension_numbers=("NCHW", "OIHW", "NCHW"))
    y_ref = y_ref + bias.reshape(1, CO, 1, 1)
    assert jnp.allclose(y, y_ref, atol=1e-4, rtol=1e-4)

    print("KERNEL_OK")
</pallas_src>

<mosaic_0001>
module attributes {stable_mosaic.version = 11 : i64} {
  func.func @conv_matmul_kernel(%arg0: i32, %arg1: memref<288x128xf32, #tpu.memory_space<vmem>>, %arg2: memref<128x128xf32, #tpu.memory_space<vmem>>, %arg3: memref<1x128xf32, #tpu.memory_space<vmem>>, %arg4: memref<288x128xf32, #tpu.memory_space<vmem>>) attributes {dimension_semantics = [#tpu.dimension_semantics<arbitrary>], iteration_bounds = array<i64: 1>, scalar_prefetch = 0 : i64, scratch_operands = 0 : i64, tpu.core_type = #tpu.core_type<tc>, window_params = [{pipeline_mode = #tpu.pipeline_mode<synchronous>, transform_indices = @transform_0, window_bounds = array<i64: 288, 128>}, {pipeline_mode = #tpu.pipeline_mode<synchronous>, transform_indices = @transform_1, window_bounds = array<i64: 128, 128>}, {pipeline_mode = #tpu.pipeline_mode<synchronous>, transform_indices = @transform_2, window_bounds = array<i64: 1, 128>}, {pipeline_mode = #tpu.pipeline_mode<synchronous>, transform_indices = @transform_3, window_bounds = array<i64: 288, 128>}]} {
    %c0 = arith.constant 0 : index
    %c0_0 = arith.constant 0 : index
    %0 = vector.load %arg1[%c0, %c0_0] : memref<288x128xf32, #tpu.memory_space<vmem>>, vector<288x128xf32>
    %c0_1 = arith.constant 0 : index
    %c0_2 = arith.constant 0 : index
    %1 = vector.load %arg2[%c0_1, %c0_2] : memref<128x128xf32, #tpu.memory_space<vmem>>, vector<128x128xf32>
    %cst = arith.constant dense<0.000000e+00> : vector<288x128xf32>
    %2 = tpu.matmul %0, %1, %cst {dimension_numbers = #tpu.dot_dimension_numbers<[1], [0], [0], [1], [0, 0, 1, 1], [], []>} : vector<288x128xf32>, vector<128x128xf32>, vector<288x128xf32> -> vector<288x128xf32>
    %c0_3 = arith.constant 0 : index
    %c0_4 = arith.constant 0 : index
    %3 = vector.load %arg3[%c0_3, %c0_4] : memref<1x128xf32, #tpu.memory_space<vmem>>, vector<1x128xf32>
    %4 = vector.broadcast %3 : vector<1x128xf32> to vector<288x128xf32>
    %5 = arith.addf %2, %4 : vector<288x128xf32>
    %c0_5 = arith.constant 0 : index
    %c0_6 = arith.constant 0 : index
    %6 = vector.load %arg4[%c0_5, %c0_6] : memref<288x128xf32, #tpu.memory_space<vmem>>, vector<288x128xf32>
    tpu.vector_store %arg4[%c0_5, %c0_6], %5 {strides = array<i32>} : memref<288x128xf32, #tpu.memory_space<vmem>>, vector<288x128xf32>,
    return
  }
  func.func @transform_0(%arg0: i32) -> (i32, i32) {
    %c0_i32 = arith.constant 0 : i32
    %c0_i32_0 = arith.constant 0 : i32
    %c0_i32_1 = arith.constant 0 : i32
    return %c0_i32, %c0_i32_0 : i32, i32
  }
  func.func @transform_1(%arg0: i32) -> (i32, i32) {
    %c0_i32 = arith.constant 0 : i32
    %c0_i32_0 = arith.constant 0 : i32
    %c0_i32_1 = arith.constant 0 : i32
    return %c0_i32, %c0_i32_0 : i32, i32
  }
  func.func @transform_2(%arg0: i32) -> (i32, i32) {
    %c0_i32 = arith.constant 0 : i32
    %c0_i32_0 = arith.constant 0 : i32
    %c0_i32_1 = arith.constant 0 : i32
    return %c0_i32, %c0_i32_0 : i32, i32
  }
  func.func @transform_3(%arg0: i32) -> (i32, i32) {
    %c0_i32 = arith.constant 0 : i32
    %c0_i32_0 = arith.constant 0 : i32
    %c0_i32_1 = arith.constant 0 : i32
    return %c0_i32, %c0_i32_0 : i32, i32
  }
}

</mosaic_0001>

<bundles_post_ra>
// kernel: test_forward.1
= control target key start
LH: loop header
LB: loop body
LE: loop exit
PB: predicated region body
PF: predicated region fallthrough
CT: control target
= control target key end

     0   :  { %s870_s1 = inlined_call_operand.vmem [shape: f32[128,128], index: 1, kind: input, shape index: {}]   ;;  %s871_s0 = inlined_call_operand.vmem [shape: f32[288,128], index: 0, kind: input, shape index: {}]   ;;  %s872_s2 = inlined_call_operand.vmem [shape: f32[1,128], index: 2, kind: input, shape index: {}]   ;;  %s873_s3 = inlined_call_operand.vmem [shape: f32[288,128], index: 3, kind: output, shape index: {}]  }
   0x1   :  { %v50_v0 = vld [vmem:[%s870_s1] sm:$0xff]  ;;  %v51_v1 = vld [vmem:[%s870_s1 + $0x8] sm:$0xff]  ;;  %v52_v2 = vld [vmem:[%s870_s1 + $0x10] sm:$0xff] }
   0x2   :  { %v497_v3 = vpack.c.bf16 %v51_v1, %v50_v0  ;;  %v53_v4 = vld [vmem:[%s870_s1 + $0x18] sm:$0xff]  ;;  %v54_v6 = vld [vmem:[%s870_s1 + $0x20] sm:$0xff]  ;;  %v55_v7 = vld [vmem:[%s870_s1 + $0x28] sm:$0xff] }
   0x3   :  { %v501_v5 = vpack.c.bf16 %v53_v4, %v52_v2  ;;  %v505_v8 = vpack.c.bf16 %v55_v7, %v54_v6  ;;  %v14_v9 = vld [vmem:[%s871_s0] sm:$0xff]  ;;  %v32_v10 = vld [vmem:[%s871_s0 + $0x90] sm:$0xff]  ;;  %v57_v12 = vld [vmem:[%s870_s1 + $0x38] sm:$0xff] }
   0x4   :  { %498 = vmatprep.subr.bf16.mxu0 %v497_v3  ;;  %529 = vmatprep.subr.bf16.mxu1 %v497_v3  ;;  %v56_v11 = vld [vmem:[%s870_s1 + $0x30] sm:$0xff]  ;;  %v58_v14 = vld [vmem:[%s870_s1 + $0x40] sm:$0xff]  ;;  %v59_v15 = vld [vmem:[%s870_s1 + $0x48] sm:$0xff] }
   0x5   :  { %500 = vmatpush3.bf16.msra.mxu0 %v497_v3  ;;  %537 = vmatpush3.bf16.msra.mxu1 %v497_v3  ;;  %v509_v13 = vpack.c.bf16 %v57_v12, %v56_v11  ;;  %v513_v16 = vpack.c.bf16 %v59_v15, %v58_v14  ;;  %v60_v17 = vld [vmem:[%s870_s1 + $0x50] sm:$0xff]  ;;  %v61_v18 = vld [vmem:[%s870_s1 + $0x58] sm:$0xff]  ;;  %v62_v20 = vld [vmem:[%s870_s1 + $0x60] sm:$0xff] }
   0x6   :  { %502 = vmatprep.subr.bf16.mxu0 %v501_v5  ;;  %530 = vmatprep.subr.bf16.mxu1 %v501_v5  ;;  %v517_v19 = vpack.c.bf16 %v61_v18, %v60_v17  ;;  %v63_v21 = vld [vmem:[%s870_s1 + $0x68] sm:$0xff]  ;;  %v64_v23 = vld [vmem:[%s870_s1 + $0x70] sm:$0xff]  ;;  %v65_v24 = vld [vmem:[%s870_s1 + $0x78] sm:$0xff] }
   0x7   :  { %443 = vmatprep.mubr.f32.mxu0 %v14_v9  ;;  %470 = vmatprep.mubr.f32.mxu1 %v32_v10  ;;  %v521_v22 = vpack.c.bf16 %v63_v21, %v62_v20  ;;  %v525_v25 = vpack.c.bf16 %v65_v24, %v64_v23  ;;  %v15_v26 = vld [vmem:[%s871_s0 + $0x8] sm:$0xff]  ;;  %v33_v27 = vld [vmem:[%s871_s0 + $0x98] sm:$0xff]  ;;  %v16_v28 = vld [vmem:[%s871_s0 + $0x10] sm:$0xff] }
   0x8   :  { %v34_v29 = vld [vmem:[%s871_s0 + $0xa0] sm:$0xff]  ;;  %v17_v30 = vld [vmem:[%s871_s0 + $0x18] sm:$0xff]  ;;  %v35_v31 = vld [vmem:[%s871_s0 + $0xa8] sm:$0xff] }
   0x9   :  { %504 = vmatpush3.bf16.msra.mxu0 %v501_v5  ;;  %538 = vmatpush3.bf16.msra.mxu1 %v501_v5  ;;  %v18_v32 = vld [vmem:[%s871_s0 + $0x20] sm:$0xff]  ;;  %v36_v33 = vld [vmem:[%s871_s0 + $0xb0] sm:$0xff]  ;;  %v19_v34 = vld [vmem:[%s871_s0 + $0x28] sm:$0xff] }
   0xa   :  { %506 = vmatprep.subr.bf16.mxu0 %v505_v8  ;;  %531 = vmatprep.subr.bf16.mxu1 %v505_v8  ;;  %v37_v35 = vld [vmem:[%s871_s0 + $0xb8] sm:$0xff]  ;;  %v20_v36 = vld [vmem:[%s871_s0 + $0x30] sm:$0xff]  ;;  %v38_v37 = vld [vmem:[%s871_s0 + $0xc0] sm:$0xff] }
   0xb   :  { %v21_v38 = vld [vmem:[%s871_s0 + $0x38] sm:$0xff]  ;;  %v39_v39 = vld [vmem:[%s871_s0 + $0xc8] sm:$0xff]  ;;  %v22_v40 = vld [vmem:[%s871_s0 + $0x40] sm:$0xff] }
   0xc   :  { %v40_v41 = vld [vmem:[%s871_s0 + $0xd0] sm:$0xff]  ;;  %v23_v42 = vld [vmem:[%s871_s0 + $0x48] sm:$0xff]  ;;  %v41_v43 = vld [vmem:[%s871_s0 + $0xd8] sm:$0xff] }
   0xd   :  { %508 = vmatpush3.bf16.msra.mxu0 %v505_v8  ;;  %539 = vmatpush3.bf16.msra.mxu1 %v505_v8  ;;  %v24_v44 = vld [vmem:[%s871_s0 + $0x50] sm:$0xff]  ;;  %v42_v45 = vld [vmem:[%s871_s0 + $0xe0] sm:$0xff]  ;;  %v25_v46 = vld [vmem:[%s871_s0 + $0x58] sm:$0xff] }
   0xe   :  { %510 = vmatprep.subr.bf16.mxu0 %v509_v13  ;;  %532 = vmatprep.subr.bf16.mxu1 %v509_v13  ;;  %v43_v47 = vld [vmem:[%s871_s0 + $0xe8] sm:$0xff]  ;;  %v26_v48 = vld [vmem:[%s871_s0 + $0x60] sm:$0xff]  ;;  %v44_v49 = vld [vmem:[%s871_s0 + $0xf0] sm:$0xff] }
   0xf   :  { %v27_v50 = vld [vmem:[%s871_s0 + $0x68] sm:$0xff]  ;;  %v45_v51 = vld [vmem:[%s871_s0 + $0xf8] sm:$0xff]  ;;  %v28_v52 = vld [vmem:[%s871_s0 + $0x70] sm:$0xff] }
  0x10   :  { %v46_v53 = vld [vmem:[%s871_s0 + $0x100] sm:$0xff]  ;;  %v29_v54 = vld [vmem:[%s871_s0 + $0x78] sm:$0xff]  ;;  %v47_v55 = vld [vmem:[%s871_s0 + $0x108] sm:$0xff] }
  0x11   :  { %512 = vmatpush3.bf16.msra.mxu0 %v509_v13  ;;  %540 = vmatpush3.bf16.msra.mxu1 %v509_v13  ;;  %v30_v56 = vld [vmem:[%s871_s0 + $0x80] sm:$0xff]  ;;  %v48_v57 = vld [vmem:[%s871_s0 + $0x110] sm:$0xff]  ;;  %v31_v58 = vld [vmem:[%s871_s0 + $0x88] sm:$0xff] }
  0x12   :  { %514 = vmatprep.subr.bf16.mxu0 %v513_v16  ;;  %533 = vmatprep.subr.bf16.mxu1 %v513_v16  ;;  %v49_v59 = vld [vmem:[%s871_s0 + $0x118] sm:$0xff]  ;;  %v724_v60 = vld [vmem:[%s872_s2] ss:$0 sm:$0xff] }
  0x15   :  { %516 = vmatpush3.bf16.msra.mxu0 %v513_v16  ;;  %541 = vmatpush3.bf16.msra.mxu1 %v513_v16 }
  0x16   :  { %518 = vmatprep.subr.bf16.mxu0 %v517_v19  ;;  %534 = vmatprep.subr.bf16.mxu1 %v517_v19 }
  0x19   :  { %520 = vmatpush3.bf16.msra.mxu0 %v517_v19  ;;  %542 = vmatpush3.bf16.msra.mxu1 %v517_v19 }
  0x1a   :  { %522 = vmatprep.subr.bf16.mxu0 %v521_v22  ;;  %535 = vmatprep.subr.bf16.mxu1 %v521_v22 }
  0x1d   :  { %524 = vmatpush3.bf16.msra.mxu0 %v521_v22  ;;  %543 = vmatpush3.bf16.msra.mxu1 %v521_v22 }
  0x1e   :  { %526 = vmatprep.subr.bf16.mxu0 %v525_v25  ;;  %536 = vmatprep.subr.bf16.mxu1 %v525_v25 }
  0x21   :  { %528 = vmatpush3.bf16.msra.mxu0 %v525_v25  ;;  %544 = vmatpush3.bf16.msra.mxu1 %v525_v25 }
  0x24   :  { %444 = vmatmul.mubr.f32.vlgmr.msra.gmra.mrb[0].mxu0 %v15_v26  ;;  %471 = vmatmul.mubr.f32.vlgmr.msra.gmra.mrb[0].mxu1 %v33_v27 }
  0x25   :  { %446 = vmatprep.mubr.f32.mxu0 %v16_v28  ;;  %473 = vmatprep.mubr.f32.mxu1 %v34_v29 }
  0x28   :  { %447 = vmatmul.mubr.f32.gmra.mrb[2].mxu0 %v17_v30  ;;  %474 = vmatmul.mubr.f32.gmra.mrb[2].mxu1 %v35_v31 }
  0x29   :  { %449 = vmatprep.mubr.f32.mxu0 %v18_v32  ;;  %476 = vmatprep.mubr.f32.mxu1 %v36_v33 }
  0x2c   :  { %450 = vmatmul.mubr.f32.gmra.mrb[4].mxu0 %v19_v34  ;;  %477 = vmatmul.mubr.f32.gmra.mrb[4].mxu1 %v37_v35 }
  0x2d   :  { %452 = vmatprep.mubr.f32.mxu0 %v20_v36  ;;  %479 = vmatprep.mubr.f32.mxu1 %v38_v37 }
  0x30   :  { %453 = vmatmul.mubr.f32.gmra.mrb[6].mxu0 %v21_v38  ;;  %480 = vmatmul.mubr.f32.gmra.mrb[6].mxu1 %v39_v39 }
  0x31   :  { %455 = vmatprep.mubr.f32.mxu0 %v22_v40  ;;  %482 = vmatprep.mubr.f32.mxu1 %v40_v41 }
  0x34   :  { %456 = vmatmul.mubr.f32.gmra.mrb[8].mxu0 %v23_v42  ;;  %483 = vmatmul.mubr.f32.gmra.mrb[8].mxu1 %v41_v43 }
  0x35   :  { %458 = vmatprep.mubr.f32.mxu0 %v24_v44  ;;  %485 = vmatprep.mubr.f32.mxu1 %v42_v45 }
  0x38   :  { %459 = vmatmul.mubr.f32.gmra.mrb[10].mxu0 %v25_v46  ;;  %486 = vmatmul.mubr.f32.gmra.mrb[10].mxu1 %v43_v47 }
  0x39   :  { %461 = vmatprep.mubr.f32.mxu0 %v26_v48  ;;  %488 = vmatprep.mubr.f32.mxu1 %v44_v49 }
  0x3c   :  { %462 = vmatmul.mubr.f32.gmra.mrb[12].mxu0 %v27_v50  ;;  %489 = vmatmul.mubr.f32.gmra.mrb[12].mxu1 %v45_v51 }
  0x3d   :  { %464 = vmatprep.mubr.f32.mxu0 %v28_v52  ;;  %491 = vmatprep.mubr.f32.mxu1 %v46_v53 }
  0x40   :  { %465 = vmatmul.mubr.f32.gmra.mrb[14].mxu0 %v29_v54  ;;  %492 = vmatmul.mubr.f32.gmra.mrb[14].mxu1 %v47_v55 }
  0x41   :  { %467 = vmatprep.mubr.f32.mxu0 %v30_v56  ;;  %494 = vmatprep.mubr.f32.mxu1 %v48_v57 }
  0x44   :  { %468 = vmatmul.mubr.f32.gmra.mrb[16].mxu0 %v31_v58  ;;  %495 = vmatmul.mubr.f32.gmra.mrb[16].mxu1 %v49_v59 }
  0xf7   :  { %v445_v61 = vpop.f32.mrb[0].mxu0  ;;  %v472_v62 = vpop.f32.mrb[0].mxu1 }
  0xf8   :  { %v145_v63 = vadd.f32 %v445_v61, %v724_v60  ;;  %v235_v0 = vadd.f32 %v472_v62, %v724_v60  ;;  %v139_v1 = vpop.f32.mrb[1].mxu0  ;;  %v229_v2 = vpop.f32.mrb[1].mxu1 }
  0xf9   :  { %v140_v3 = vadd.f32 %v724_v60, %v139_v1  ;;  %v230_v4 = vadd.f32 %v724_v60, %v229_v2 }
  0xfa   :  { %319 = vst [vmem:[%s873_s3 + $0x8] sm:$0xff] %v145_v63  ;;  %337 = vst [vmem:[%s873_s3 + $0x98] sm:$0xff] %v235_v0 }
  0xfb   :  { %318 = vst [vmem:[%s873_s3] sm:$0xff] %v140_v3  ;;  %336 = vst [vmem:[%s873_s3 + $0x90] sm:$0xff] %v230_v4  ;;  %v448_v5 = vpop.f32.mrb[2].mxu0  ;;  %v475_v6 = vpop.f32.mrb[2].mxu1 }
  0xfc   :  { %v155_v7 = vadd.f32 %v448_v5, %v724_v60  ;;  %v245_v8 = vadd.f32 %v475_v6, %v724_v60  ;;  %v149_v9 = vpop.f32.mrb[3].mxu0  ;;  %v239_v10 = vpop.f32.mrb[3].mxu1 }
  0xfd   :  { %v150_v11 = vadd.f32 %v724_v60, %v149_v9  ;;  %v240_v12 = vadd.f32 %v724_v60, %v239_v10 }
  0xfe   :  { %321 = vst [vmem:[%s873_s3 + $0x18] sm:$0xff] %v155_v7  ;;  %339 = vst [vmem:[%s873_s3 + $0xa8] sm:$0xff] %v245_v8 }
  0xff   :  { %320 = vst [vmem:[%s873_s3 + $0x10] sm:$0xff] %v150_v11  ;;  %338 = vst [vmem:[%s873_s3 + $0xa0] sm:$0xff] %v240_v12  ;;  %v451_v13 = vpop.f32.mrb[4].mxu0  ;;  %v478_v14 = vpop.f32.mrb[4].mxu1 }
 0x100   :  { %v165_v15 = vadd.f32 %v451_v13, %v724_v60  ;;  %v255_v16 = vadd.f32 %v478_v14, %v724_v60  ;;  %v159_v17 = vpop.f32.mrb[5].mxu0  ;;  %v249_v18 = vpop.f32.mrb[5].mxu1 }
 0x101   :  { %v160_v19 = vadd.f32 %v724_v60, %v159_v17  ;;  %v250_v20 = vadd.f32 %v724_v60, %v249_v18 }
 0x102   :  { %323 = vst [vmem:[%s873_s3 + $0x28] sm:$0xff] %v165_v15  ;;  %341 = vst [vmem:[%s873_s3 + $0xb8] sm:$0xff] %v255_v16 }
 0x103   :  { %322 = vst [vmem:[%s873_s3 + $0x20] sm:$0xff] %v160_v19  ;;  %340 = vst [vmem:[%s873_s3 + $0xb0] sm:$0xff] %v250_v20  ;;  %v454_v21 = vpop.f32.mrb[6].mxu0  ;;  %v481_v22 = vpop.f32.mrb[6].mxu1 }
 0x104   :  { %v175_v23 = vadd.f32 %v454_v21, %v724_v60  ;;  %v265_v24 = vadd.f32 %v481_v22, %v724_v60  ;;  %v169_v25 = vpop.f32.mrb[7].mxu0  ;;  %v259_v26 = vpop.f32.mrb[7].mxu1 }
 0x105   :  { %v170_v27 = vadd.f32 %v724_v60, %v169_v25  ;;  %v260_v28 = vadd.f32 %v724_v60, %v259_v26 }
 0x106   :  { %325 = vst [vmem:[%s873_s3 + $0x38] sm:$0xff] %v175_v23  ;;  %343 = vst [vmem:[%s873_s3 + $0xc8] sm:$0xff] %v265_v24 }
 0x107   :  { %324 = vst [vmem:[%s873_s3 + $0x30] sm:$0xff] %v170_v27  ;;  %342 = vst [vmem:[%s873_s3 + $0xc0] sm:$0xff] %v260_v28  ;;  %v457_v29 = vpop.f32.mrb[8].mxu0  ;;  %v484_v30 = vpop.f32.mrb[8].mxu1 }
 0x108   :  { %v185_v31 = vadd.f32 %v457_v29, %v724_v60  ;;  %v275_v32 = vadd.f32 %v484_v30, %v724_v60  ;;  %v179_v33 = vpop.f32.mrb[9].mxu0  ;;  %v269_v34 = vpop.f32.mrb[9].mxu1 }
 0x109   :  { %v180_v35 = vadd.f32 %v724_v60, %v179_v33  ;;  %v270_v36 = vadd.f32 %v724_v60, %v269_v34 }
 0x10a   :  { %327 = vst [vmem:[%s873_s3 + $0x48] sm:$0xff] %v185_v31  ;;  %345 = vst [vmem:[%s873_s3 + $0xd8] sm:$0xff] %v275_v32 }
 0x10b   :  { %326 = vst [vmem:[%s873_s3 + $0x40] sm:$0xff] %v180_v35  ;;  %344 = vst [vmem:[%s873_s3 + $0xd0] sm:$0xff] %v270_v36  ;;  %v460_v37 = vpop.f32.mrb[10].mxu0  ;;  %v487_v38 = vpop.f32.mrb[10].mxu1 }
 0x10c   :  { %v195_v39 = vadd.f32 %v460_v37, %v724_v60  ;;  %v285_v40 = vadd.f32 %v487_v38, %v724_v60  ;;  %v189_v41 = vpop.f32.mrb[11].mxu0  ;;  %v279_v42 = vpop.f32.mrb[11].mxu1 }
 0x10d   :  { %v190_v43 = vadd.f32 %v724_v60, %v189_v41  ;;  %v280_v44 = vadd.f32 %v724_v60, %v279_v42 }
 0x10e   :  { %329 = vst [vmem:[%s873_s3 + $0x58] sm:$0xff] %v195_v39  ;;  %347 = vst [vmem:[%s873_s3 + $0xe8] sm:$0xff] %v285_v40 }
 0x10f   :  { %328 = vst [vmem:[%s873_s3 + $0x50] sm:$0xff] %v190_v43  ;;  %346 = vst [vmem:[%s873_s3 + $0xe0] sm:$0xff] %v280_v44  ;;  %v463_v45 = vpop.f32.mrb[12].mxu0  ;;  %v490_v46 = vpop.f32.mrb[12].mxu1 }
 0x110   :  { %v205_v47 = vadd.f32 %v463_v45, %v724_v60  ;;  %v295_v48 = vadd.f32 %v490_v46, %v724_v60  ;;  %v199_v49 = vpop.f32.mrb[13].mxu0  ;;  %v289_v50 = vpop.f32.mrb[13].mxu1 }
 0x111   :  { %v200_v51 = vadd.f32 %v724_v60, %v199_v49  ;;  %v290_v52 = vadd.f32 %v724_v60, %v289_v50 }
 0x112   :  { %331 = vst [vmem:[%s873_s3 + $0x68] sm:$0xff] %v205_v47  ;;  %349 = vst [vmem:[%s873_s3 + $0xf8] sm:$0xff] %v295_v48 }
 0x113   :  { %330 = vst [vmem:[%s873_s3 + $0x60] sm:$0xff] %v200_v51  ;;  %348 = vst [vmem:[%s873_s3 + $0xf0] sm:$0xff] %v290_v52  ;;  %v466_v53 = vpop.f32.mrb[14].mxu0  ;;  %v493_v54 = vpop.f32.mrb[14].mxu1 }
 0x114   :  { %v215_v55 = vadd.f32 %v466_v53, %v724_v60  ;;  %v305_v56 = vadd.f32 %v493_v54, %v724_v60  ;;  %v209_v57 = vpop.f32.mrb[15].mxu0  ;;  %v299_v58 = vpop.f32.mrb[15].mxu1 }
 0x115   :  { %v210_v59 = vadd.f32 %v724_v60, %v209_v57  ;;  %v300_v61 = vadd.f32 %v724_v60, %v299_v58 }
 0x116   :  { %333 = vst [vmem:[%s873_s3 + $0x78] sm:$0xff] %v215_v55  ;;  %351 = vst [vmem:[%s873_s3 + $0x108] sm:$0xff] %v305_v56 }
 0x117   :  { %332 = vst [vmem:[%s873_s3 + $0x70] sm:$0xff] %v210_v59  ;;  %350 = vst [vmem:[%s873_s3 + $0x100] sm:$0xff] %v300_v61  ;;  %v469_v62 = vpop.f32.mrb[16].mxu0  ;;  %v496_v63 = vpop.f32.mrb[16].mxu1 }
 0x118   :  { %v225_v0 = vadd.f32 %v469_v62, %v724_v60  ;;  %v315_v1 = vadd.f32 %v496_v63, %v724_v60  ;;  %v219_v2 = vpop.f32.mrb[17].mxu0  ;;  %v309_v3 = vpop.f32.mrb[17].mxu1 }
 0x119   :  { %v220_v4 = vadd.f32 %v724_v60, %v219_v2  ;;  %v310_v5 = vadd.f32 %v724_v60, %v309_v3 }
 0x11a   :  { %335 = vst [vmem:[%s873_s3 + $0x88] sm:$0xff] %v225_v0  ;;  %353 = vst [vmem:[%s873_s3 + $0x118] sm:$0xff] %v315_v1 }
 0x11b   :  { %334 = vst [vmem:[%s873_s3 + $0x80] sm:$0xff] %v220_v4  ;;  %352 = vst [vmem:[%s873_s3 + $0x110] sm:$0xff] %v310_v5 }

</bundles_post_ra>
